<compile_context>
chip_gen: v7x
topology: tpu7x:2x2x1
jax: 0.10.0
libtpu: 0.0.40
codegen_flags: <defaults>
</compile_context>

<pallas_src>
import functools

import jax
import jax.numpy as jnp
from jax.experimental import pallas as pl
from jax.experimental.pallas import tpu as pltpu


def _round_up(x: int, m: int) -> int:
    return ((x + m - 1) // m) * m


def _pad_to(a: jax.Array, shape) -> jax.Array:
    pads = [(0, s - d) for d, s in zip(a.shape, shape)]
    if any(p[1] for p in pads):
        a = jnp.pad(a, pads)
    return a


def _bmm_bias_kernel(x_ref, w_ref, b_ref, o_ref, acc_ref):
    # x_ref: (bt, tm, tk), w_ref: (bt, tk, tn), b_ref: (bt, 1, tn),
    # o_ref: (bt, tm, tn), acc_ref: (bt, tm, tn) f32 scratch.
    k = pl.program_id(3)

    @pl.when(k == 0)
    def _init():
        acc_ref[...] = jnp.zeros_like(acc_ref)

    # MXU matmul (batched over the packed batch-tile), f32 accumulation.
    acc_ref[...] += jnp.einsum(
        "bmk,bkn->bmn", x_ref[...], w_ref[...],
        preferred_element_type=jnp.float32)

    @pl.when(k == pl.num_programs(3) - 1)
    def _finalize():
        # Bias add on the f32 accumulator (VPU), then a single cast to output dtype.
        o_ref[...] = (acc_ref[...] + b_ref[...].astype(jnp.float32)).astype(o_ref.dtype)


@functools.partial(jax.jit, static_argnames=())
def bmm_layer(x: jax.Array, weights: jax.Array, biases: jax.Array) -> jax.Array:
    """Batched matmul + bias: (B,M,K) @ (B,K,N) + (B,1,N) -> (B,M,N)."""
    B, M, K = x.shape
    Bw, Kw, N = weights.shape
    assert B == Bw and K == Kw, "shape mismatch between x and weights"
    biases = jnp.broadcast_to(biases, (B, 1, N)).astype(x.dtype)

    itemsize = jnp.dtype(x.dtype).itemsize

    # ---- tile plan -----------------------------------------------------------
    # Sublane/lane alignment: tm % 8 == 0, tn % 128 == 0, tk % 128 == 0.
    tm = min(256, _round_up(M, 8))
    tn = min(256, _round_up(N, 128))
    tk = min(512, _round_up(K, 128))

    M_pad = _round_up(M, tm)
    N_pad = _round_up(N, tn)
    K_pad = _round_up(K, tk)

    # Pack several batches per grid step when one batch's whole problem fits in a
    # single tile set (amortizes per-step overhead, fills lanes for tiny M/N/K).
    if M_pad <= tm and N_pad <= tn and K_pad <= tk:
        per_batch_bytes = ((M_pad * K_pad + K_pad * N_pad + M_pad * N_pad) * itemsize
                           + M_pad * N_pad * 4)  # + f32 accumulator
        bt = int(max(1, min(B, (8 << 20) // max(per_batch_bytes, 1), 32)))
    else:
        bt = 1
    B_pad = _round_up(B, bt)

    grid = (B_pad // bt, M_pad // tm, N_pad // tn, K_pad // tk)

    # ---- padding (zero K-padding is exact; M/N/B padding is sliced off) -------
    x_p = _pad_to(x, (B_pad, M_pad, K_pad))
    w_p = _pad_to(weights, (B_pad, K_pad, N_pad))
    b_p = _pad_to(biases, (B_pad, 1, N_pad))

    # ---- VMEM budget hint ------------------------------------------------------
    tile_bytes = bt * (tm * tk + tk * tn + 8 * tn + tm * tn) * itemsize
    acc_bytes = bt * tm * tn * 4
    vmem_limit = int(min(max(3 * tile_bytes + acc_bytes, 32 * 1024 * 1024),
                         48 * 1024 * 1024))

    out = pl.pallas_call(
        _bmm_bias_kernel,
        out_shape=jax.ShapeDtypeStruct((B_pad, M_pad, N_pad), x.dtype),
        grid_spec=pltpu.PrefetchScalarGridSpec(
            num_scalar_prefetch=0,
            grid=grid,
            in_specs=[
                pl.BlockSpec((bt, tm, tk), lambda b, i, j, k: (b, i, k)),
                pl.BlockSpec((bt, tk, tn), lambda b, i, j, k: (b, k, j)),
                pl.BlockSpec((bt, 1, tn), lambda b, i, j, k: (b, 0, j)),
            ],
            out_specs=pl.BlockSpec((bt, tm, tn), lambda b, i, j, k: (b, i, j)),
            scratch_shapes=[pltpu.VMEM((bt, tm, tn), jnp.float32)],
        ),
        compiler_params=pltpu.CompilerParams(
            dimension_semantics=("parallel", "parallel", "parallel", "arbitrary"),
            vmem_limit_bytes=vmem_limit,
        ),
        cost_estimate=pl.CostEstimate(
            flops=2 * B * M * K * N,
            transcendentals=0,
            bytes_accessed=itemsize * (B * M * K + B * K * N + B * N + B * M * N),
        ),
    )(x_p, w_p, b_p)

    return out[:B, :M, :N]


if __name__ == "__main__":
    # Small shapes consistent with torch.bmm: batch=2, M=8, K=32, N=16.
    B, M, K, N = 2, 8, 32, 16

    key = jax.random.PRNGKey(0)
    kx, kw, kb = jax.random.split(key, 3)

    x = jax.random.normal(kx, (B, M, K), dtype=jnp.float32)
    # Deterministic parameter init (the module's __init__ only holds placeholders).
    weights = jax.random.normal(kw, (B, K, N), dtype=jnp.float32) * 0.1
    biases = jax.random.normal(kb, (B, 1, N), dtype=jnp.float32) * 0.1

    out = bmm_layer(x, weights, biases)
    out = jax.block_until_ready(out)

    # Reference check against plain JAX (same semantics as torch.bmm + broadcast add).
    ref = jnp.einsum("bmk,bkn->bmn", x, weights) + biases
    assert out.shape == (B, M, N)
    assert jnp.allclose(out, ref, atol=1e-5, rtol=1e-5), "mismatch vs reference"

    print("KERNEL_OK")
</pallas_src>

<mosaic_0001>
module attributes {stable_mosaic.version = 11 : i64} {
  func.func @_bmm_bias_kernel(%arg0: i32, %arg1: i32, %arg2: i32, %arg3: i32, %arg4: memref<2x8x128xf32, #tpu.memory_space<vmem>>, %arg5: memref<2x128x128xf32, #tpu.memory_space<vmem>>, %arg6: memref<2x1x128xf32, #tpu.memory_space<vmem>>, %arg7: memref<2x8x128xf32, #tpu.memory_space<vmem>>, %arg8: memref<2x8x128xf32, #tpu.memory_space<vmem>>) attributes {dimension_semantics = [#tpu.dimension_semantics<parallel>, #tpu.dimension_semantics<parallel>, #tpu.dimension_semantics<parallel>, #tpu.dimension_semantics<arbitrary>], iteration_bounds = array<i64: 1, 1, 1, 1>, scalar_prefetch = 0 : i64, scratch_operands = 1 : i64, tpu.core_type = #tpu.core_type<tc>, window_params = [{transform_indices = @transform_0, window_bounds = array<i64: 2, 8, 128>}, {transform_indices = @transform_1, window_bounds = array<i64: 2, 128, 128>}, {transform_indices = @transform_2, window_bounds = array<i64: 2, 1, 128>}, {transform_indices = @transform_3, window_bounds = array<i64: 2, 8, 128>}]} {
    %c0_i32 = arith.constant 0 : i32
    %0 = arith.cmpi eq, %arg3, %c0_i32 : i32
    %1 = arith.extui %0 : i1 to i32
    %c0_i32_0 = arith.constant 0 : i32
    %2 = arith.cmpi ne, %1, %c0_i32_0 : i32
    scf.if %2 {
      %cst_14 = arith.constant 0.000000e+00 : f32
      %12 = vector.broadcast %cst_14 : f32 to vector<2x8x128xf32>
      %c0_15 = arith.constant 0 : index
      %c0_16 = arith.constant 0 : index
      %c0_17 = arith.constant 0 : index
      %13 = vector.load %arg8[%c0_15, %c0_16, %c0_17] : memref<2x8x128xf32, #tpu.memory_space<vmem>>, vector<2x8x128xf32>
      tpu.vector_store %arg8[%c0_15, %c0_16, %c0_17], %12 {strides = array<i32>} : memref<2x8x128xf32, #tpu.memory_space<vmem>>, vector<2x8x128xf32>,
    } else {
    }
    %c0 = arith.constant 0 : index
    %c0_1 = arith.constant 0 : index
    %c0_2 = arith.constant 0 : index
    %3 = vector.load %arg8[%c0, %c0_1, %c0_2] : memref<2x8x128xf32, #tpu.memory_space<vmem>>, vector<2x8x128xf32>
    %c0_3 = arith.constant 0 : index
    %c0_4 = arith.constant 0 : index
    %c0_5 = arith.constant 0 : index
    %4 = vector.load %arg4[%c0_3, %c0_4, %c0_5] : memref<2x8x128xf32, #tpu.memory_space<vmem>>, vector<2x8x128xf32>
    %c0_6 = arith.constant 0 : index
    %c0_7 = arith.constant 0 : index
    %c0_8 = arith.constant 0 : index
    %5 = vector.load %arg5[%c0_6, %c0_7, %c0_8] : memref<2x128x128xf32, #tpu.memory_space<vmem>>, vector<2x128x128xf32>
    "tpu.trace_start"() <{level = 10 : i32, message = "bmk,bkn->bmn"}> : () -> ()
    %cst = arith.constant dense<0.000000e+00> : vector<2x8x128xf32>
    %6 = tpu.matmul %4, %5, %cst {dimension_numbers = #tpu.dot_dimension_numbers<[2], [1], [1], [2], [0, 0, 0, 1, 1, 2], [0], [0]>} : vector<2x8x128xf32>, vector<2x128x128xf32>, vector<2x8x128xf32> -> vector<2x8x128xf32>
    "tpu.trace_stop"() : () -> ()
    %7 = arith.addf %3, %6 : vector<2x8x128xf32>
    %c0_9 = arith.constant 0 : index
    %c0_10 = arith.constant 0 : index
    %c0_11 = arith.constant 0 : index
    %8 = vector.load %arg8[%c0_9, %c0_10, %c0_11] : memref<2x8x128xf32, #tpu.memory_space<vmem>>, vector<2x8x128xf32>
    tpu.vector_store %arg8[%c0_9, %c0_10, %c0_11], %7 {strides = array<i32>} : memref<2x8x128xf32, #tpu.memory_space<vmem>>, vector<2x8x128xf32>,
    %c0_i32_12 = arith.constant 0 : i32
    %9 = arith.cmpi eq, %arg3, %c0_i32_12 : i32
    %10 = arith.extui %9 : i1 to i32
    %c0_i32_13 = arith.constant 0 : i32
    %11 = arith.cmpi ne, %10, %c0_i32_13 : i32
    scf.if %11 {
      %c0_14 = arith.constant 0 : index
      %c0_15 = arith.constant 0 : index
      %c0_16 = arith.constant 0 : index
      %12 = vector.load %arg8[%c0_14, %c0_15, %c0_16] : memref<2x8x128xf32, #tpu.memory_space<vmem>>, vector<2x8x128xf32>
      %c0_17 = arith.constant 0 : index
      %c0_18 = arith.constant 0 : index
      %c0_19 = arith.constant 0 : index
      %13 = vector.load %arg6[%c0_17, %c0_18, %c0_19] : memref<2x1x128xf32, #tpu.memory_space<vmem>>, vector<2x1x128xf32>
      %14 = vector.broadcast %13 : vector<2x1x128xf32> to vector<2x8x128xf32>
      %15 = arith.addf %12, %14 : vector<2x8x128xf32>
      %c0_20 = arith.constant 0 : index
      %c0_21 = arith.constant 0 : index
      %c0_22 = arith.constant 0 : index
      %16 = vector.load %arg7[%c0_20, %c0_21, %c0_22] : memref<2x8x128xf32, #tpu.memory_space<vmem>>, vector<2x8x128xf32>
      tpu.vector_store %arg7[%c0_20, %c0_21, %c0_22], %15 {strides = array<i32>} : memref<2x8x128xf32, #tpu.memory_space<vmem>>, vector<2x8x128xf32>,
    } else {
    }
    return
  }
  func.func @transform_0(%arg0: i32, %arg1: i32, %arg2: i32, %arg3: i32) -> (i32, i32, i32) {
    %c0_i32 = arith.constant 0 : i32
    return %arg0, %arg1, %arg3 : i32, i32, i32
  }
  func.func @transform_1(%arg0: i32, %arg1: i32, %arg2: i32, %arg3: i32) -> (i32, i32, i32) {
    %c0_i32 = arith.constant 0 : i32
    return %arg0, %arg3, %arg2 : i32, i32, i32
  }
  func.func @transform_2(%arg0: i32, %arg1: i32, %arg2: i32, %arg3: i32) -> (i32, i32, i32) {
    %c0_i32 = arith.constant 0 : i32
    %c0_i32_0 = arith.constant 0 : i32
    return %arg0, %c0_i32, %arg2 : i32, i32, i32
  }
  func.func @transform_3(%arg0: i32, %arg1: i32, %arg2: i32, %arg3: i32) -> (i32, i32, i32) {
    %c0_i32 = arith.constant 0 : i32
    return %arg0, %arg1, %arg2 : i32, i32, i32
  }
}

</mosaic_0001>

<bundles_post_ra>
// kernel: bmm_layer.1
= control target key start
LH: loop header
LB: loop body
LE: loop exit
PB: predicated region body
PF: predicated region fallthrough
CT: control target
= control target key end

     0   :  { %v424_v3 = vmov 0.0|0.0   ;;  %vm425_vm0 = vmmov 0   ;;  %v426_v11 = vmov 0.0   ;;  %s586_s0 = inlined_call_operand.vmem [shape: f32[2,8,128], index: 0, kind: input, shape index: {}]   ;;  %s587_s1 = inlined_call_operand.vmem [shape: f32[2,128,128], index: 1, kind: input, shape index: {}]   ;;  %s588_s2 = inlined_call_operand.vmem [shape: f32[2,1,128], index: 2, kind: input, shape index: {}]   ;;  %s589_s3 = inlined_call_operand.hbm [shape: f32[2,8,128], index: 3, kind: output, shape index: {}]  }
   0x1   :  { %v25_v0 = vld [vmem:[%s587_s1] sm:$0xff]  ;;  %v26_v1 = vld [vmem:[%s587_s1 + $0x8] sm:$0xff]  ;;  %346 = vmatprep.subr.bf16.mxu0 %v424_v3  ;;  %370 = vmatprep.subr.bf16.mxu1 %v424_v3  ;;  %v27_v6 = vld [vmem:[%s587_s1 + $0x10] sm:$0xff] }
   0x2   :  { %v41_v2 = vld [vmem:[%s587_s1 + $0x80] sm:$0xff]  ;;  %v347_v4 = vpack.c.bf16 %v26_v1, %v25_v0  ;;  %v42_v5 = vld [vmem:[%s587_s1 + $0x88] sm:$0xff]  ;;  %v28_v7 = vld [vmem:[%s587_s1 + $0x18] sm:$0xff]  ;;  %308 = vmatprep.mubr.msk.f32.mxu0 %vm425_vm0, %v426_v11  ;;  %343 = vmatprep.mubr.msk.f32.mxu1 %vm425_vm0, %v426_v11 }
   0x3   :  { %v371_v8 = vpack.c.bf16 %v42_v5, %v41_v2  ;;  %v43_v9 = vld [vmem:[%s587_s1 + $0x90] sm:$0xff]  ;;  %v44_v10 = vld [vmem:[%s587_s1 + $0x98] sm:$0xff]  ;;  %v350_v12 = vpack.c.bf16 %v28_v7, %v27_v6  ;;  %v29_v14 = vld [vmem:[%s587_s1 + $0x20] sm:$0xff] }
   0x4   :  { %348 = vmatpush3.bf16.msra.mxu0 %v347_v4  ;;  %v374_v13 = vpack.c.bf16 %v44_v10, %v43_v9  ;;  %v30_v15 = vld [vmem:[%s587_s1 + $0x28] sm:$0xff]  ;;  %v45_v16 = vld [vmem:[%s587_s1 + $0xa0] sm:$0xff]  ;;  %v31_v20 = vld [vmem:[%s587_s1 + $0x30] sm:$0xff] }
   0x5   :  { %372 = vmatpush3.bf16.msra.mxu1 %v371_v8  ;;  %349 = vmatprep.subr.bf16.mxu0 %v424_v3  ;;  %v46_v17 = vld [vmem:[%s587_s1 + $0xa8] sm:$0xff]  ;;  %v353_v18 = vpack.c.bf16 %v30_v15, %v29_v14  ;;  %v32_v21 = vld [vmem:[%s587_s1 + $0x38] sm:$0xff]  ;;  %v47_v22 = vld [vmem:[%s587_s1 + $0xb0] sm:$0xff] }
   0x6   :  { %373 = vmatprep.subr.bf16.mxu1 %v424_v3  ;;  %v377_v19 = vpack.c.bf16 %v46_v17, %v45_v16  ;;  %v48_v23 = vld [vmem:[%s587_s1 + $0xb8] sm:$0xff]  ;;  %v356_v24 = vpack.c.bf16 %v32_v21, %v31_v20 }
   0x8   :  { %351 = vmatpush3.bf16.msra.mxu0 %v350_v12 }
   0x9   :  { %375 = vmatpush3.bf16.msra.mxu1 %v374_v13  ;;  %352 = vmatprep.subr.bf16.mxu0 %v424_v3 }
   0xa   :  { %376 = vmatprep.subr.bf16.mxu1 %v424_v3 }
   0xc   :  { %354 = vmatpush3.bf16.msra.mxu0 %v353_v18 }
   0xd   :  { %8 = vsyncpa [#allocation4], 0  ;;  %378 = vmatpush3.bf16.msra.mxu1 %v377_v19  ;;  %355 = vmatprep.subr.bf16.mxu0 %v424_v3  ;;  %v380_v25 = vpack.c.bf16 %v48_v23, %v47_v22  ;;  %v33_v26 = vld [vmem:[%s587_s1 + $0x40] sm:$0xff]  ;;  %v34_v27 = vld [vmem:[%s587_s1 + $0x48] sm:$0xff]  ;;  %s427_s27 = smov [#allocation3]  }
   0xe   :  { %379 = vmatprep.subr.bf16.mxu1 %v424_v3  ;;  %v49_v28 = vld [vmem:[%s587_s1 + $0xc0] sm:$0xff]  ;;  %v50_v29 = vld [vmem:[%s587_s1 + $0xc8] sm:$0xff]  ;;  %v359_v30 = vpack.c.bf16 %v34_v27, %v33_v26  ;;  %v35_v32 = vld [vmem:[%s587_s1 + $0x50] sm:$0xff]  ;;  %s229_s28 = sshll.u32 %s427_s27, 4  ;;  %s230_s28 = int_to_ptr.vmem [resolvable:$true] %s229_s28 }
   0xf   :  { %v383_v31 = vpack.c.bf16 %v50_v29, %v49_v28  ;;  %v36_v33 = vld [vmem:[%s587_s1 + $0x58] sm:$0xff]  ;;  %v51_v34 = vld [vmem:[%s587_s1 + $0xd0] sm:$0xff]  ;;  %v37_v38 = vld [vmem:[%s587_s1 + $0x60] sm:$0xff]  ;;  %p405_p1 = scmp.lt.s32.totalorder %s230_s28, %s230_s28 }
  0x10   :  { %357 = vmatpush3.bf16.msra.mxu0 %v356_v24  ;;  %v52_v35 = vld [vmem:[%s587_s1 + $0xd8] sm:$0xff]  ;;  %v362_v36 = vpack.c.bf16 %v36_v33, %v35_v32  ;;  %v38_v39 = vld [vmem:[%s587_s1 + $0x68] sm:$0xff]  ;;  %v53_v40 = vld [vmem:[%s587_s1 + $0xe0] sm:$0xff] }
  0x11   :  { %381 = vmatpush3.bf16.msra.mxu1 %v380_v25  ;;  %358 = vmatprep.subr.bf16.mxu0 %v424_v3  ;;  %v386_v37 = vpack.c.bf16 %v52_v35, %v51_v34  ;;  %v54_v41 = vld [vmem:[%s587_s1 + $0xe8] sm:$0xff]  ;;  %v365_v42 = vpack.c.bf16 %v38_v39, %v37_v38  ;;  %v39_v44 = vld [vmem:[%s587_s1 + $0x70] sm:$0xff]  ;;  %v40_v45 = vld [vmem:[%s587_s1 + $0x78] sm:$0xff] }
  0x12   :  { %382 = vmatprep.subr.bf16.mxu1 %v424_v3  ;;  %v389_v43 = vpack.c.bf16 %v54_v41, %v53_v40  ;;  %v55_v46 = vld [vmem:[%s587_s1 + $0xf0] sm:$0xff]  ;;  %v56_v47 = vld [vmem:[%s587_s1 + $0xf8] sm:$0xff]  ;;  %v368_v48 = vpack.c.bf16 %v40_v45, %v39_v44  ;;  %v23_v50 = vld [vmem:[%s586_s0] sm:$0xff] }
  0x13   :  { %v392_v49 = vpack.c.bf16 %v56_v47, %v55_v46  ;;  %v24_v51 = vld [vmem:[%s586_s0 + $0x8] sm:$0xff]  ;;  %v240_v52 = vld [vmem:[%s588_s2] ss:$0 sm:$0xff]  ;;  %v241_v53 = vld [vmem:[%s588_s2 + $0x1] ss:$0 sm:$0xff]  ;;  %s400_s0 = scalar_lea.vmem %s230_s28, 256 }
  0x14   :  { %360 = vmatpush3.bf16.msra.mxu0 %v359_v30  ;;  %p401_p0 = scmp.ne.s32.totalorder %s230_s28, %s400_s0  ;;  %p406_p2 = scmp.lt.s32.totalorder %s400_s0, %s400_s0 }
  0x15   :  { %384 = vmatpush3.bf16.msra.mxu1 %v383_v31  ;;  %361 = vmatprep.subr.bf16.mxu0 %v424_v3 }
  0x16   :  { %385 = vmatprep.subr.bf16.mxu1 %v424_v3  ;;  %p407_p3 = por %p406_p2, %p405_p1 }
  0x18   :  { %363 = vmatpush3.bf16.msra.mxu0 %v362_v36  ;;  %p408_p4 = pnand %p407_p3, %p401_p0 }
  0x19   :  { %387 = vmatpush3.bf16.msra.mxu1 %v386_v37  ;;  %364 = vmatprep.subr.bf16.mxu0 %v424_v3 }
  0x1a   :  { %388 = vmatprep.subr.bf16.mxu1 %v424_v3 }
  0x1c   :  { %366 = vmatpush3.bf16.msra.mxu0 %v365_v42 }
  0x1d   :  { %390 = vmatpush3.bf16.msra.mxu1 %v389_v43  ;;  %367 = vmatprep.subr.bf16.mxu0 %v424_v3 }
  0x1e   :  { %391 = vmatprep.subr.bf16.mxu1 %v424_v3 }
  0x20   :  { %369 = vmatpush3.bf16.msra.mxu0 %v368_v48 }
  0x21   :  { %393 = vmatpush3.bf16.msra.mxu1 %v392_v49 }
  0x23   :  { %309 = vmatmul.mubr.f32.vlgmr.msra.gmra.mrb[0].mxu0 %v23_v50 }
  0x24   :  { %344 = vmatmul.mubr.f32.vlgmr.msra.gmra.mrb[0].mxu1 %v24_v51 }
  0xf6   :  { %v123_v54 = vpop.f32.mrb[0].mxu0 }
  0xf7   :  { %v220_v55 = vadd.f32 %v240_v52, %v123_v54  ;;  %v193_v56 = vpop.f32.mrb[0].mxu1  ;;  %v310_v57 = vpop.f32.mrb[1].mxu0 }
  0xf8   :  { %v221_v58 = vadd.f32 %v241_v53, %v193_v56  ;;  %v345_v59 = vpop.f32.mrb[1].mxu1 }
  0xf9   :  { %222 = vst [vmem:[#allocation3] sm:$0xff] %v220_v55 }
  0xfa   :  { %223 = vst [vmem:[#allocation3 + $0x8] sm:$0xff] %v221_v58 }
  0xfb   :  { %411 = shalt.err (!%p408_p4)
}
  0xfc   :  { %s412_s2 = scalar_lea.hbm %s589_s3, 256 }
  0xfd   :  { %p413_p5 = scmp.ne.s32.totalorder %s589_s3, %s412_s2  ;;  %p416_p6 = scmp.lt.u32.totalorder %s412_s2, %s589_s3 }
  0xff   :  { %p418_p7 = pnand %p416_p6, %p413_p5 }
 0x101   :  { %421 = shalt.err (!%p418_p7)
}
 0x102   :  { %s428_s10 = smov 128   ;;  %s429_s11 = smov 8  }
 0x103   :  { %235 = dma.vmem_to_hbm [thread:$0]  %s230_s28, 256, %s589_s3, [#allocation4], %s428_s10, %s428_s10, %s429_s11  }
 0x104   :  { %422 = dma.done.wait [#allocation4], 256  }
 0x105   :  { %423 = vsyncadd [#allocation4], 4294967040 }
 0x106   :  { %239 = vsyncpa [#allocation4], 1 }

</bundles_post_ra>
